<compile_context>
chip_gen: v5e
topology: v5e:2x2
jax: 0.10.0
libtpu: 0.0.40
codegen_flags: <defaults>
</compile_context>

<pallas_src>
import functools

import jax
import jax.numpy as jnp
from jax import lax
from jax.experimental import pallas as pl
from jax.experimental.pallas import tpu as pltpu


def _round_up(a, b):
    return (a + b - 1) // b * b


def _grid_sample_kernel(inp_ref, grid_ref, out_ref, *, C, H, W, compute_dtype):
    inp = inp_ref[0]                         # (C*H, W)
    g = grid_ref[0]                          # (2, TP) lane-dense coords
    tp = g.shape[1]

    x = g[0:1, :]                            # (1, TP) normalized x (width)
    y = g[1:2, :]                            # (1, TP) normalized y (height)

    # align_corners=False unnormalization (PyTorch convention).
    ix = ((x + 1.0) * W - 1.0) * 0.5
    iy = ((y + 1.0) * H - 1.0) * 0.5

    x0 = jnp.floor(ix)
    y0 = jnp.floor(iy)
    x1 = x0 + 1.0
    y1 = y0 + 1.0
    wx1 = ix - x0
    wx0 = 1.0 - wx1
    wy1 = iy - y0
    wy0 = 1.0 - wy1

    def taps(size, c0, c1, w0, w1):
        # (size, 1) iota broadcast against lane-dense (1, TP) indices in the
        # compare; no dense (size, TP) int32 intermediate is materialized.
        q = lax.broadcasted_iota(jnp.int32, (size, 1), 0)
        upper = float(size - 1)
        # zeros padding: out-of-bounds taps contribute 0 (NaN coords -> 0 too).
        v0 = jnp.where((c0 >= 0.0) & (c0 <= upper), w0, 0.0)    # (1, TP)
        v1 = jnp.where((c1 >= 0.0) & (c1 <= upper), w1, 0.0)
        i0 = c0.astype(jnp.int32)    # weight is zero whenever the tap is OOB,
        i1 = c1.astype(jnp.int32)    # so a wrapped / garbage index is harmless
        # additive accumulation: zero-weight collisions cannot clobber taps.
        return jnp.where(q == i0, v0, 0.0) + jnp.where(q == i1, v1, 0.0)

    wmat_x = taps(W, x0, x1, wx0, wx1)       # (W, TP)
    wmat_y = taps(H, y0, y1, wy0, wy1)       # (H, TP)

    lhs = inp
    if compute_dtype is not None:            # optional bf16 MXU path (flagged:
        lhs = lhs.astype(compute_dtype)      # ~1e-3 rel error in the weights)
        wmat_x = wmat_x.astype(compute_dtype)

    # MXU: (C*H, W) @ (W, TP) -> (C*H, TP), f32 accumulation.
    t = jnp.dot(lhs, wmat_x, preferred_element_type=jnp.float32)
    t = t.reshape(C, H, tp)
    out = jnp.sum(t * wmat_y[None, :, :], axis=1)    # (C, TP)
    out_ref[0] = out.astype(out_ref.dtype)


def _pick_tp(P, N, tp_max):
    """Multiple of 128 <= tp_max minimizing padding waste, then split so the
    grid has >= 2 steps (v7x has 2 TensorCores)."""
    hi = max(128, min(_round_up(tp_max, 128), _round_up(P, 128)))
    best_tp, best_pad = 128, _round_up(P, 128) - P
    tp = 128
    while tp <= hi:
        pad = _round_up(P, tp) - P
        if pad < best_pad or (pad == best_pad and tp > best_tp):
            best_tp, best_pad = tp, pad
        tp += 128
    while best_tp > 128 and N * (_round_up(P, best_tp) // best_tp) < 2:
        best_tp -= 128
    return best_tp


def _vmem_limit_bytes(C, H, W, TP):
    # Per-step working set: double-buffered image/grid/out blocks plus
    # in-kernel f32 intermediates (Wx, Wy, T, out), with 2x slack.
    blocks = 2 * (C * H * W + 2 * TP + C * TP) * 4
    interm = ((W + H) * TP + C * H * TP + C * TP) * 4
    want = 2 * (blocks + interm) + (4 << 20)
    try:
        cap = int(pltpu.get_tpu_info().vmem_capacity_bytes)
    except Exception:
        cap = 64 << 20                       # v7x floor
    upper = max(32 << 20, min(cap - (8 << 20), 100 << 20))
    return int(min(max(want, 32 << 20), upper))


def grid_sample(inp, grid, *, tp_max=512, compute_dtype=None):
    """inp: (N, C, H, W) f32, grid: (N, Ho, Wo, 2) f32 -> (N, C, Ho, Wo).

    Matches torch.nn.functional.grid_sample defaults (bilinear, zeros padding,
    align_corners=False).  compute_dtype=jnp.bfloat16 enables the bf16 MXU
    path (faster at large C, ~1e-3 relative weight error)."""
    N, C, H, W = inp.shape
    _, Ho, Wo, _ = grid.shape
    P = Ho * Wo

    TP = _pick_tp(P, N, tp_max)
    P_pad = _round_up(P, TP)

    # Image reshaped so the W (x) contraction is a canonical (C*H, W) @ (W, TP)
    # MXU feed.
    inp_flat = inp.reshape(N, C * H, W)

    # Sampling grid transposed lane-dense: (N, 2, P_pad).
    grid_t = jnp.transpose(grid.reshape(N, P, 2), (0, 2, 1))
    if P_pad != P:
        # Pad with an out-of-range coord: all taps invalid -> zeros; padded
        # columns are sliced off below anyway.
        grid_t = jnp.pad(grid_t, ((0, 0), (0, 0), (0, P_pad - P)),
                         constant_values=-2.0)

    kernel = functools.partial(_grid_sample_kernel, C=C, H=H, W=W,
                               compute_dtype=compute_dtype)

    cost = pl.CostEstimate(
        flops=(2 * N * C * H * W * P_pad        # x-contraction matmul
               + 2 * N * C * H * P_pad          # y weighted reduce
               + 8 * N * (H + W) * P_pad),      # tap build
        transcendentals=0,
        bytes_accessed=(inp_flat.size + grid_t.size + N * C * P_pad) * 4,
    )

    out = pl.pallas_call(
        kernel,
        out_shape=jax.ShapeDtypeStruct((N, C, P_pad), inp.dtype),
        grid_spec=pltpu.PrefetchScalarGridSpec(
            num_scalar_prefetch=0,
            grid=(N, P_pad // TP),
            in_specs=[
                # Image block stays resident across all P tiles of a batch
                # (index_map constant in p -> no re-fetch per tile).
                pl.BlockSpec((1, C * H, W), lambda n, p: (n, 0, 0)),
                pl.BlockSpec((1, 2, TP), lambda n, p: (n, 0, p)),
            ],
            out_specs=pl.BlockSpec((1, C, TP), lambda n, p: (n, 0, p)),
        ),
        compiler_params=pltpu.CompilerParams(
            dimension_semantics=("parallel", "parallel"),
            vmem_limit_bytes=_vmem_limit_bytes(C, H, W, TP),
        ),
        cost_estimate=cost,
    )(inp_flat, grid_t)

    return out[:, :, :P].reshape(N, C, Ho, Wo)


def grid_sample_ref(inp, grid):
    """Pure-JAX reference mirroring PyTorch bilinear / zeros / align_corners=False."""
    N, C, H, W = inp.shape
    x = grid[..., 0]
    y = grid[..., 1]
    ix = ((x + 1.0) * W - 1.0) * 0.5
    iy = ((y + 1.0) * H - 1.0) * 0.5
    x0 = jnp.floor(ix)
    x1 = x0 + 1.0
    y0 = jnp.floor(iy)
    y1 = y0 + 1.0
    wx1 = ix - x0
    wx0 = 1.0 - wx1
    wy1 = iy - y0
    wy0 = 1.0 - wy1

    def sample_one(inp_n, xc, yc, w):
        valid = ((xc >= 0) & (xc <= W - 1) & (yc >= 0) & (yc <= H - 1))
        xi = jnp.clip(xc, 0, W - 1).astype(jnp.int32)
        yi = jnp.clip(yc, 0, H - 1).astype(jnp.int32)
        v = inp_n[:, yi, xi]                       # (C, Ho, Wo)
        return v * (w * valid.astype(w.dtype))[None]

    def per_batch(inp_n, x0n, x1n, y0n, y1n, wx0n, wx1n, wy0n, wy1n):
        return (sample_one(inp_n, x0n, y0n, wx0n * wy0n) +
                sample_one(inp_n, x1n, y0n, wx1n * wy0n) +
                sample_one(inp_n, x0n, y1n, wx0n * wy1n) +
                sample_one(inp_n, x1n, y1n, wx1n * wy1n))

    return jax.vmap(per_batch)(inp, x0, x1, y0, y1, wx0, wx1, wy0, wy1)


if __name__ == "__main__":
    key = jax.random.PRNGKey(0)
    k_inp, k_grid = jax.random.split(key)

    N, C, H, W = 2, 4, 16, 16
    Ho, Wo = 8, 8

    inp = jax.random.normal(k_inp, (N, C, H, W), dtype=jnp.float32)
    # sampling grid in [-1.1, 1.1] to exercise the zeros padding path
    grid = jax.random.uniform(k_grid, (N, Ho, Wo, 2), dtype=jnp.float32,
                              minval=-1.1, maxval=1.1)

    out = jax.block_until_ready(grid_sample(inp, grid))
    ref = jax.block_until_ready(grid_sample_ref(inp, grid))

    assert out.shape == (N, C, Ho, Wo)
    assert jnp.allclose(out, ref, atol=1e-5, rtol=1e-5), (
        f"mismatch: max abs err = {jnp.max(jnp.abs(out - ref))}")
    print("KERNEL_OK")
</pallas_src>

<mosaic_0001>
module attributes {stable_mosaic.version = 11 : i64} {
  func.func @_grid_sample_kernel(%arg0: i32, %arg1: i32, %arg2: memref<1x64x16xf32, #tpu.memory_space<vmem>>, %arg3: memref<1x2x128xf32, #tpu.memory_space<vmem>>, %arg4: memref<1x4x128xf32, #tpu.memory_space<vmem>>) attributes {dimension_semantics = [#tpu.dimension_semantics<parallel>, #tpu.dimension_semantics<parallel>], iteration_bounds = array<i64: 2, 1>, scalar_prefetch = 0 : i64, scratch_operands = 0 : i64, tpu.core_type = #tpu.core_type<tc>, window_params = [{transform_indices = @transform_0, window_bounds = array<i64: 1, 64, 16>}, {transform_indices = @transform_1, window_bounds = array<i64: 1, 2, 128>}, {transform_indices = @transform_2, window_bounds = array<i64: 1, 4, 128>}]} {
    %c0 = arith.constant 0 : index
    %c0_0 = arith.constant 0 : index
    %c0_1 = arith.constant 0 : index
    %0 = vector.load %arg2[%c0, %c0_0, %c0_1] : memref<1x64x16xf32, #tpu.memory_space<vmem>>, vector<1x64x16xf32>
    %1 = vector.shape_cast %0 : vector<1x64x16xf32> to vector<64x16xf32>
    %c0_2 = arith.constant 0 : index
    %c0_3 = arith.constant 0 : index
    %c0_4 = arith.constant 0 : index
    %2 = vector.load %arg3[%c0_2, %c0_3, %c0_4] : memref<1x2x128xf32, #tpu.memory_space<vmem>>, vector<1x2x128xf32>
    %3 = vector.shape_cast %2 : vector<1x2x128xf32> to vector<2x128xf32>
    %4 = vector.extract_strided_slice %3 {offsets = [0, 0], sizes = [1, 128], strides = [1, 1]} : vector<2x128xf32> to vector<1x128xf32>
    %5 = vector.extract_strided_slice %3 {offsets = [1, 0], sizes = [1, 128], strides = [1, 1]} : vector<2x128xf32> to vector<1x128xf32>
    %cst = arith.constant 1.000000e+00 : f32
    %6 = vector.broadcast %cst : f32 to vector<1x128xf32>
    %7 = arith.addf %4, %6 : vector<1x128xf32>
    %cst_5 = arith.constant 1.600000e+01 : f32
    %8 = vector.broadcast %cst_5 : f32 to vector<1x128xf32>
    %9 = arith.mulf %7, %8 : vector<1x128xf32>
    %cst_6 = arith.constant 1.000000e+00 : f32
    %10 = vector.broadcast %cst_6 : f32 to vector<1x128xf32>
    %11 = arith.subf %9, %10 : vector<1x128xf32>
    %cst_7 = arith.constant 5.000000e-01 : f32
    %12 = vector.broadcast %cst_7 : f32 to vector<1x128xf32>
    %13 = arith.mulf %11, %12 : vector<1x128xf32>
    %cst_8 = arith.constant 1.000000e+00 : f32
    %14 = vector.broadcast %cst_8 : f32 to vector<1x128xf32>
    %15 = arith.addf %5, %14 : vector<1x128xf32>
    %cst_9 = arith.constant 1.600000e+01 : f32
    %16 = vector.broadcast %cst_9 : f32 to vector<1x128xf32>
    %17 = arith.mulf %15, %16 : vector<1x128xf32>
    %cst_10 = arith.constant 1.000000e+00 : f32
    %18 = vector.broadcast %cst_10 : f32 to vector<1x128xf32>
    %19 = arith.subf %17, %18 : vector<1x128xf32>
    %cst_11 = arith.constant 5.000000e-01 : f32
    %20 = vector.broadcast %cst_11 : f32 to vector<1x128xf32>
    %21 = arith.mulf %19, %20 : vector<1x128xf32>
    %22 = math.floor %13 : vector<1x128xf32>
    %23 = math.floor %21 : vector<1x128xf32>
    %cst_12 = arith.constant 1.000000e+00 : f32
    %24 = vector.broadcast %cst_12 : f32 to vector<1x128xf32>
    %25 = arith.addf %22, %24 : vector<1x128xf32>
    %cst_13 = arith.constant 1.000000e+00 : f32
    %26 = vector.broadcast %cst_13 : f32 to vector<1x128xf32>
    %27 = arith.addf %23, %26 : vector<1x128xf32>
    %28 = arith.subf %13, %22 : vector<1x128xf32>
    %cst_14 = arith.constant 1.000000e+00 : f32
    %29 = vector.broadcast %cst_14 : f32 to vector<1x128xf32>
    %30 = arith.subf %29, %28 : vector<1x128xf32>
    %31 = arith.subf %21, %23 : vector<1x128xf32>
    %cst_15 = arith.constant 1.000000e+00 : f32
    %32 = vector.broadcast %cst_15 : f32 to vector<1x128xf32>
    %33 = arith.subf %32, %31 : vector<1x128xf32>
    %34 = tpu.iota {dimensions = array<i32: 0>} : vector<16x1xi32>
    %cst_16 = arith.constant 0.000000e+00 : f32
    %35 = vector.broadcast %cst_16 : f32 to vector<1x128xf32>
    %36 = arith.cmpf oge, %22, %35 : vector<1x128xf32>
    %cst_17 = arith.constant 1.500000e+01 : f32
    %37 = vector.broadcast %cst_17 : f32 to vector<1x128xf32>
    %38 = arith.cmpf ole, %22, %37 : vector<1x128xf32>
    %39 = arith.andi %36, %38 : vector<1x128xi1>
    %cst_18 = arith.constant 0.000000e+00 : f32
    %40 = vector.broadcast %cst_18 : f32 to vector<1x128xf32>
    %41 = arith.select %39, %30, %40 : vector<1x128xi1>, vector<1x128xf32>
    %cst_19 = arith.constant 0.000000e+00 : f32
    %42 = vector.broadcast %cst_19 : f32 to vector<1x128xf32>
    %43 = arith.cmpf oge, %25, %42 : vector<1x128xf32>
    %cst_20 = arith.constant 1.500000e+01 : f32
    %44 = vector.broadcast %cst_20 : f32 to vector<1x128xf32>
    %45 = arith.cmpf ole, %25, %44 : vector<1x128xf32>
    %46 = arith.andi %43, %45 : vector<1x128xi1>
    %cst_21 = arith.constant 0.000000e+00 : f32
    %47 = vector.broadcast %cst_21 : f32 to vector<1x128xf32>
    %48 = arith.select %46, %28, %47 : vector<1x128xi1>, vector<1x128xf32>
    %49 = arith.fptosi %22 : vector<1x128xf32> to vector<1x128xi32>
    %50 = arith.fptosi %25 : vector<1x128xf32> to vector<1x128xi32>
    %51 = vector.broadcast %34 : vector<16x1xi32> to vector<16x128xi32>
    %52 = vector.broadcast %49 : vector<1x128xi32> to vector<16x128xi32>
    %53 = arith.cmpi eq, %51, %52 : vector<16x128xi32>
    %cst_22 = arith.constant 0.000000e+00 : f32
    %54 = vector.shape_cast %41 : vector<1x128xf32> to vector<1x128xf32>
    %55 = vector.broadcast %54 : vector<1x128xf32> to vector<16x128xf32>
    %56 = vector.broadcast %cst_22 : f32 to vector<16x128xf32>
    %57 = arith.select %53, %55, %56 : vector<16x128xi1>, vector<16x128xf32>
    %58 = vector.broadcast %34 : vector<16x1xi32> to vector<16x128xi32>
    %59 = vector.broadcast %50 : vector<1x128xi32> to vector<16x128xi32>
    %60 = arith.cmpi eq, %58, %59 : vector<16x128xi32>
    %cst_23 = arith.constant 0.000000e+00 : f32
    %61 = vector.shape_cast %48 : vector<1x128xf32> to vector<1x128xf32>
    %62 = vector.broadcast %61 : vector<1x128xf32> to vector<16x128xf32>
    %63 = vector.broadcast %cst_23 : f32 to vector<16x128xf32>
    %64 = arith.select %60, %62, %63 : vector<16x128xi1>, vector<16x128xf32>
    %65 = arith.addf %57, %64 : vector<16x128xf32>
    %66 = tpu.iota {dimensions = array<i32: 0>} : vector<16x1xi32>
    %cst_24 = arith.constant 0.000000e+00 : f32
    %67 = vector.broadcast %cst_24 : f32 to vector<1x128xf32>
    %68 = arith.cmpf oge, %23, %67 : vector<1x128xf32>
    %cst_25 = arith.constant 1.500000e+01 : f32
    %69 = vector.broadcast %cst_25 : f32 to vector<1x128xf32>
    %70 = arith.cmpf ole, %23, %69 : vector<1x128xf32>
    %71 = arith.andi %68, %70 : vector<1x128xi1>
    %cst_26 = arith.constant 0.000000e+00 : f32
    %72 = vector.broadcast %cst_26 : f32 to vector<1x128xf32>
    %73 = arith.select %71, %33, %72 : vector<1x128xi1>, vector<1x128xf32>
    %cst_27 = arith.constant 0.000000e+00 : f32
    %74 = vector.broadcast %cst_27 : f32 to vector<1x128xf32>
    %75 = arith.cmpf oge, %27, %74 : vector<1x128xf32>
    %cst_28 = arith.constant 1.500000e+01 : f32
    %76 = vector.broadcast %cst_28 : f32 to vector<1x128xf32>
    %77 = arith.cmpf ole, %27, %76 : vector<1x128xf32>
    %78 = arith.andi %75, %77 : vector<1x128xi1>
    %cst_29 = arith.constant 0.000000e+00 : f32
    %79 = vector.broadcast %cst_29 : f32 to vector<1x128xf32>
    %80 = arith.select %78, %31, %79 : vector<1x128xi1>, vector<1x128xf32>
    %81 = arith.fptosi %23 : vector<1x128xf32> to vector<1x128xi32>
    %82 = arith.fptosi %27 : vector<1x128xf32> to vector<1x128xi32>
    %83 = vector.broadcast %66 : vector<16x1xi32> to vector<16x128xi32>
    %84 = vector.broadcast %81 : vector<1x128xi32> to vector<16x128xi32>
    %85 = arith.cmpi eq, %83, %84 : vector<16x128xi32>
    %cst_30 = arith.constant 0.000000e+00 : f32
    %86 = vector.shape_cast %73 : vector<1x128xf32> to vector<1x128xf32>
    %87 = vector.broadcast %86 : vector<1x128xf32> to vector<16x128xf32>
    %88 = vector.broadcast %cst_30 : f32 to vector<16x128xf32>
    %89 = arith.select %85, %87, %88 : vector<16x128xi1>, vector<16x128xf32>
    %90 = vector.broadcast %66 : vector<16x1xi32> to vector<16x128xi32>
    %91 = vector.broadcast %82 : vector<1x128xi32> to vector<16x128xi32>
    %92 = arith.cmpi eq, %90, %91 : vector<16x128xi32>
    %cst_31 = arith.constant 0.000000e+00 : f32
    %93 = vector.shape_cast %80 : vector<1x128xf32> to vector<1x128xf32>
    %94 = vector.broadcast %93 : vector<1x128xf32> to vector<16x128xf32>
    %95 = vector.broadcast %cst_31 : f32 to vector<16x128xf32>
    %96 = arith.select %92, %94, %95 : vector<16x128xi1>, vector<16x128xf32>
    %97 = arith.addf %89, %96 : vector<16x128xf32>
    %cst_32 = arith.constant dense<0.000000e+00> : vector<64x128xf32>
    %98 = tpu.matmul %1, %65, %cst_32 {dimension_numbers = #tpu.dot_dimension_numbers<[1], [0], [0], [1], [0, 0, 1, 1], [], []>} : vector<64x16xf32>, vector<16x128xf32>, vector<64x128xf32> -> vector<64x128xf32>
    %99 = vector.shape_cast %98 : vector<64x128xf32> to vector<4x16x128xf32>
    %100 = vector.shape_cast %97 : vector<16x128xf32> to vector<1x16x128xf32>
    %101 = vector.broadcast %100 : vector<1x16x128xf32> to vector<4x16x128xf32>
    %102 = arith.mulf %99, %101 : vector<4x16x128xf32>
    %cst_33 = arith.constant dense<0.000000e+00> : vector<4x128xf32>
    %103 = vector.multi_reduction <add>, %102, %cst_33 [1] : vector<4x16x128xf32> to vector<4x128xf32>
    %c0_34 = arith.constant 0 : index
    %c0_35 = arith.constant 0 : index
    %c0_36 = arith.constant 0 : index
    %104 = vector.load %arg4[%c0_34, %c0_35, %c0_36] : memref<1x4x128xf32, #tpu.memory_space<vmem>>, vector<1x4x128xf32>
    %105 = vector.shape_cast %104 : vector<1x4x128xf32> to vector<4x128xf32>
    %106 = vector.shape_cast %103 : vector<4x128xf32> to vector<1x4x128xf32>
    tpu.vector_store %arg4[%c0_34, %c0_35, %c0_36], %106 {strides = array<i32>} : memref<1x4x128xf32, #tpu.memory_space<vmem>>, vector<1x4x128xf32>,
    return
  }
  func.func @transform_0(%arg0: i32, %arg1: i32) -> (i32, i32, i32) {
    %c0_i32 = arith.constant 0 : i32
    %c0_i32_0 = arith.constant 0 : i32
    %c0_i32_1 = arith.constant 0 : i32
    return %arg0, %c0_i32, %c0_i32_0 : i32, i32, i32
  }
  func.func @transform_1(%arg0: i32, %arg1: i32) -> (i32, i32, i32) {
    %c0_i32 = arith.constant 0 : i32
    %c0_i32_0 = arith.constant 0 : i32
    return %arg0, %c0_i32, %arg1 : i32, i32, i32
  }
  func.func @transform_2(%arg0: i32, %arg1: i32) -> (i32, i32, i32) {
    %c0_i32 = arith.constant 0 : i32
    %c0_i32_0 = arith.constant 0 : i32
    return %arg0, %c0_i32, %arg1 : i32, i32, i32
  }
}

</mosaic_0001>

<bundles_post_ra>
// kernel: tpu_custom_call.1
= control target key start
LH: loop header
LB: loop body
LE: loop exit
PB: predicated region body
PF: predicated region fallthrough
CT: control target
= control target key end

     0   :  { %7 = vsyncpa [#allocation3], 0  ;;  %s764_s0 = inlined_call_operand.vmem [shape: f32[2,64,16], index: 0, kind: input, shape index: {}]   ;;  %s765_s1 = inlined_call_operand.vmem [shape: f32[2,2,128], index: 1, kind: input, shape index: {}]   ;;  %s766_s2 = inlined_call_operand.hbm [shape: f32[2,4,128], index: 2, kind: output, shape index: {}]  }
   0x1   :  { %9 = vsyncpa [#allocation3 + $0x1], 0  ;;  %s642_s9 = smov 0   ;;  %s644_s10 = smov 0  }
   0x2   :  { %s646_s11 = smov 0   ;;  %s648_s12 = smov 0  }
   0x3   :  { %s650_s13 = smov 0   ;;  %s652_s14 = smov 0  }
   0x4 LB: > { %s456_s15 = sadd.s32 4294967295, %s625_s14   ;;  %s457_s16 = sadd.s32 4294967294, %s625_s14   ;;  %s625_s14 = sphi %s652_s14, %s15_s14   ;;  %s621_s13 = sphi %s650_s13, %s773_s13   ;;  %s617_s12 = sphi %s648_s12, %s772_s12   ;;  %s613_s11 = sphi %s646_s11, %s771_s11   ;;  %s609_s10 = sphi %s644_s10, %s770_s10   ;;  %s605_s9 = sphi %s642_s9, %s769_s9  }
   0x5   : > { %s27_s17 = sadd.s32 1, %s621_s13  ;;  %s90_s18 = sadd.s32 1, %s613_s11 }
   0x6   : > { %p29_p0 = scmp.ge.s32.totalorder %s27_s17, 2  ;;  %p100_p1 = scmp.ne.s32.totalorder %s613_s11, %s609_s10 }
   0x7   : > { %p101_p2 = scmp.eq.s32.totalorder %s456_s15, 1  ;;  %p106_p3 = scmp.ne.s32.totalorder %s609_s10, %s605_s9 }
   0x8   : > { %s775_s17 = smov (%p29_p0, %s27_s17), 0  ;;  %p107_p5 = scmp.eq.s32.totalorder %s457_s16, 1 }
   0x9   : > { %p682_p4 = por %p101_p2, %p100_p1  ;;  %s85_s20 = ssub.s32 %s621_s13, %s775_s17 }
   0xa   : > { %p460_p6 = scmp.ge.s32.totalorder %s625_s14, 1  ;;  %p88_p7 = scmp.eq.s32.totalorder %s85_s20, 0 }
   0xb   : > { %p689_p8 = por %p107_p5, %p106_p3  ;;  %p143_p9 = scmp.lt.s32.totalorder %s625_s14, 3 }
   0xc   : > { %s695_s22 = scalar_select %p88_p7, %s613_s11, %s90_s18  }
   0xd   : > { %p144_p10 = pnand %p460_p6, %p143_p9 }
   0xe   : > { %p172_p11 = scmp.lt.s32.totalorder (!%p144_p10), %s617_s12, 1  ;;  %s169_s4 = sand.u32 (!%p144_p10), 1, %s609_s10  }
   0xf   : > { %147 = sbr.rel (%p144_p10) target bundleno = 215 (0xd7), region = 28  ;;  %s461_s5 = sshll.u32 (!%p144_p10), %s169_s4, 2 }
  0x10   : > { %s475_s6 = sshll.u32 (!%p144_p10), %s617_s12, 2  ;;  %s171_s16 = scalar_lea.vmem (!%p144_p10), [#allocation2], %s461_s5 }
  0x11   : > { %s368_s15 = scalar_lea.hbm (!%p144_p10), %s766_s2, %s475_s6  ;;  %s370_s18 = sshll.u32 (!%p144_p10), %s171_s16, 4  ;;  %s371_s18 = int_to_ptr.vmem [resolvable:$true] %s370_s18 }
  0x12   : > { %s372_s20 = sshll.u32 (!%p144_p10), %s368_s15, 4  ;;  %s373_s20 = int_to_ptr.hbm [resolvable:$true] %s372_s20 }
  0x14   : > { %s699_s23 = scalar_select %p172_p11, %s617_s12, 1  ;;  %v201_v3 = vlaneseq  ;;  %vm242_vm13 = vcmask 130048  }
  0x15   : > { %s357_s12 = scalar_lea.sflag [#allocation3], %s169_s4 }
  0x16   : > { %s464_s24 = sshll.u32 %s699_s23, 1  ;;  %v202_v6 = vshrl.u32 %v201_v3, 7  ;;  %s478_s28 = sshll.u32 %s699_s23, 6 }
  0x17   : > { %s183_s27 = scalar_lea.vmem %s765_s1, %s464_s24  ;;  %s176_s3 = scalar_lea.vmem %s764_s0, %s478_s28 }
  0x18   : > { %v192_v0 = vld [vmem:[%s183_s27] sm:$0x3]  ;;  %v705_v10 = vadd.s32 8, %v202_v6  ;;  %v186_v37 = vld [vmem:[%s176_s3 + $0x10] sm:$0xff]  ;;  %v185_v40 = vld [vmem:[%s176_s3 + $0x8] sm:$0xff]  ;;  %s561_s23 = sshra.s32 %s373_s20, 4  ;;  %s562_s23 = int_to_ptr.hbm [resolvable:$true] %s561_s23 }
  0x19   : > { %v193_v1 = vadd.f32 1.0, %v192_v0  ;;  %v184_v36 = vld [vmem:[%s176_s3] sm:$0xff]  ;;  %v190_v39 = vld [vmem:[%s176_s3 + $0x30] sm:$0xff]  ;;  %v187_v41 = vld [vmem:[%s176_s3 + $0x18] sm:$0xff]  ;;  %s563_s24 = scalar_lea.hbm %s562_s23, 4  ;;  %s567_s27 = scalar_lea.hbm %s766_s2, 8 }
  0x1a   : > { %v188_v38 = vld [vmem:[%s176_s3 + $0x20] sm:$0xff]  ;;  %v189_v42 = vld [vmem:[%s176_s3 + $0x28] sm:$0xff]  ;;  %v191_v43 = vld [vmem:[%s176_s3 + $0x38] sm:$0xff]  ;;  %p564_p12 = scmp.ne.s32.totalorder %s562_s23, %s563_s24  ;;  %p568_p1 = scmp.lt.s32.totalorder %s562_s23, %s766_s2 }
  0x1b   : > { %v194_v2 = vmul.f32 16.0, %v193_v1  ;;  %p569_p2 = scmp.lt.s32.totalorder %s567_s27, %s563_s24 }
  0x1c   : > { %p565_p13 = pnand %p564_p12, %p682_p4 }
  0x1d   : > { %v465_v4 = vadd.f32 -1.0, %v194_v2  ;;  %p570_p3 = por %p569_p2, %p568_p1 }
  0x1e   : > { %p566_p0 = pneg %p565_p13 }
  0x1f   : > { %v196_v5 = vmul.f32 0.5, %v465_v4 }
  0x20   : > { %p571_p5 = pnand %p570_p3, %p566_p0 }
  0x21   : > { %v197_v7 = vfloor.f32 %v196_v5 }
  0x23   : > { %v198_v8 = vadd.f32 1.0, %v197_v7  ;;  %v199_v9 = vsub.f32 %v196_v5, %v197_v7  ;;  %vm204_vm0 = vcmp.ge.f32.partialorder %v197_v7, 0.0  ;;  %vm205_vm1 = vcmp.le.f32.partialorder %v197_v7, 15.0 }
  0x24   : > { %vm206_vm2 = vmand %vm204_vm0, %vm205_vm1  ;;  %v486_v11 = vcvt.f32.s32 %v197_v7  ;;  %vm348_vm0 = vcmask 1041409   ;;  %vm350_vm1 = vcmask 1042434  }
  0x25   : > { %v200_v12 = vsub.f32 1.0, %v199_v9  ;;  %vm208_vm3 = vcmp.ge.f32.partialorder %v198_v8, 0.0  ;;  %vm209_vm4 = vcmp.le.f32.partialorder %v198_v8, 15.0  ;;  %vm487_vm5 = vcmp.lt.s32.totalorder %v198_v8, 0 }
  0x26   : > { %vm210_vm6 = vmand %vm208_vm3, %vm209_vm4  ;;  %v488_v13 = vceil.f32 %v198_v8  ;;  %v489_v14 = vfloor.f32 %v198_v8  ;;  %v214_v15 = vperm.slane %v486_v11, 0  ;;  %v228_v16 = vperm.slane %v486_v11, 1 }
  0x27   : > { %v207_v17 = vsel %vm206_vm2, %v200_v12, 0.0  ;;  %v211_v18 = vsel %vm210_vm6, %v199_v9, 0.0  ;;  %vm352_vm2 = vcmask 1043459  }
  0x28   : > { %v490_v19 = vsel %vm487_vm5, %v488_v13, %v489_v14  ;;  %vm216_vm7 = vcmp.eq.s32.totalorder %v705_v10, %v214_v15  ;;  %v217_v20 = vperm.slane %v207_v17, 0  ;;  %vm215_vm8 = vcmp.eq.s32.totalorder %v202_v6, %v214_v15 }
  0x29   : > { %v491_v21 = vcvt.f32.s32 %v490_v19  ;;  %vm229_vm9 = vcmp.eq.s32.totalorder %v202_v6, %v228_v16  ;;  %v231_v22 = vperm.slane %v207_v17, 1  ;;  %v223_v23 = vperm.slane %v211_v18, 0 }
  0x2a   : > { %v237_v24 = vperm.slane %v211_v18, 1  ;;  %v219_v28 = vsel %vm216_vm7, %v217_v20, 0.0  ;;  %v218_v29 = vsel %vm215_vm8, %v217_v20, 0.0  ;;  %vm230_vm14 = vcmp.eq.s32.totalorder %v705_v10, %v228_v16 }
  0x2b   : > { %v220_v25 = vperm.slane %v491_v21, 0  ;;  %v232_v26 = vsel %vm229_vm9, %v231_v22, 0.0  ;;  %v234_v27 = vperm.slane %v491_v21, 1  ;;  %v233_v44 = vsel %vm230_vm14, %v231_v22, 0.0 }
  0x2d   : > { %vm222_vm10 = vcmp.eq.s32.totalorder %v705_v10, %v220_v25  ;;  %vm221_vm11 = vcmp.eq.s32.totalorder %v202_v6, %v220_v25  ;;  %vm235_vm12 = vcmp.eq.s32.totalorder %v202_v6, %v234_v27  ;;  %vm236_vm15 = vcmp.eq.s32.totalorder %v705_v10, %v234_v27 }
  0x2e   : > { %v225_v30 = vsel %vm222_vm10, %v223_v23, 0.0  ;;  %v224_v31 = vsel %vm221_vm11, %v223_v23, 0.0  ;;  %v238_v32 = vsel %vm235_vm12, %v237_v24, 0.0  ;;  %v239_v45 = vsel %vm236_vm15, %v237_v24, 0.0 }
  0x2f   : > { %v227_v33 = vadd.f32 %v225_v30, %v219_v28  ;;  %v226_v34 = vadd.f32 %v224_v31, %v218_v29  ;;  %v240_v35 = vadd.f32 %v238_v32, %v232_v26  ;;  %v241_v46 = vadd.f32 %v239_v45, %v233_v44 }
  0x31   : > { %281 = vmatpush.msra.mxu0 %v227_v33  ;;  %479 = vmatpush.msra.mxu1 %v227_v33 }
  0x32   : > { %480 = vmatpush.msra.mxu2 %v227_v33  ;;  %481 = vmatpush.msra.mxu3 %v227_v33 }
  0x33   : > { %282 = vmatpush.msra.mxu0 %v226_v34  ;;  %482 = vmatpush.msra.mxu1 %v226_v34 }
  0x34   : > { %483 = vmatpush.msra.mxu2 %v226_v34  ;;  %484 = vmatpush.msra.mxu3 %v226_v34 }
  0x35   : > { %466 = vmatmul.msk.f32.vlgmr.msra.gmra.mxu0 %vm242_vm13, %v184_v36  ;;  %468 = vmatmul.msk.f32.vlgmr.msra.gmra.mxu1 %vm242_vm13, %v186_v37 }
  0x36   : > { %470 = vmatmul.msk.f32.vlgmr.msra.gmra.mxu2 %vm242_vm13, %v188_v38  ;;  %472 = vmatmul.msk.f32.vlgmr.msra.gmra.mxu3 %vm242_vm13, %v190_v39 }
  0x3d   : > { %467 = vmatmul.msk.f32.gmra.mxu0 %vm242_vm13, %v185_v40  ;;  %469 = vmatmul.msk.f32.gmra.mxu1 %vm242_vm13, %v187_v41 }
  0x3e   : > { %471 = vmatmul.msk.f32.gmra.mxu2 %vm242_vm13, %v189_v42  ;;  %473 = vmatmul.msk.f32.gmra.mxu3 %vm242_vm13, %v191_v43 }
  0xb2   : > { %v284_v47 = vpop.f32.mrf.mxu0  ;;  %v290_v48 = vpop.f32.mrf.mxu1 }
  0xb3   : > { %v308_v53 = vmul.f32 %v284_v47, %v240_v35  ;;  %v310_v54 = vmul.f32 %v290_v48, %v240_v35 }
  0xb9   : > { %v296_v49 = vpop.f32.mrf.mxu2  ;;  %v302_v50 = vpop.f32.mrf.mxu3 }
  0xba   : > { %v287_v51 = vpop.f32.mrf.mxu0  ;;  %v293_v52 = vpop.f32.mrf.mxu1  ;;  %v312_v1 = vmul.f32 %v296_v49, %v240_v35  ;;  %v314_v2 = vmul.f32 %v302_v50, %v240_v35 }
  0xbb   : > { %v309_v55 = vmul.f32 %v287_v51, %v241_v46  ;;  %v311_v56 = vmul.f32 %v293_v52, %v241_v46 }
  0xbd   : > { %v316_v57 = vadd.f32 %v309_v55, %v308_v53  ;;  %v323_v58 = vadd.f32 %v311_v56, %v310_v54 }
  0xbf   : > { %v317_v59 = vrot.slane %v316_v57, 4  ;;  %v324_v60 = vrot.slane %v323_v58, 4 }
  0xc1   : > { %v318_v61 = vadd.f32 %v317_v59, %v316_v57  ;;  %v325_v62 = vadd.f32 %v324_v60, %v323_v58  ;;  %v299_v63 = vpop.f32.mrf.mxu2  ;;  %v305_v0 = vpop.f32.mrf.mxu3 }
  0xc2   : > { %v313_v3 = vmul.f32 %v299_v63, %v241_v46  ;;  %v315_v4 = vmul.f32 %v305_v0, %v241_v46 }
  0xc3   : > { %v319_v5 = vrot.slane %v318_v61, 2  ;;  %v326_v6 = vrot.slane %v325_v62, 2 }
  0xc4   : > { %v330_v7 = vadd.f32 %v313_v3, %v312_v1  ;;  %v337_v8 = vadd.f32 %v315_v4, %v314_v2 }
  0xc5   : > { %v320_v9 = vadd.f32 %v319_v5, %v318_v61  ;;  %v327_v10 = vadd.f32 %v326_v6, %v325_v62 }
  0xc6   : > { %v331_v11 = vrot.slane %v330_v7, 4  ;;  %v338_v12 = vrot.slane %v337_v8, 4 }
  0xc7   : > { %v321_v13 = vrot.slane %v320_v9, 1  ;;  %v328_v14 = vrot.slane %v327_v10, 1 }
  0xc8   : > { %v332_v15 = vadd.f32 %v331_v11, %v330_v7  ;;  %v339_v16 = vadd.f32 %v338_v12, %v337_v8 }
  0xc9   : > { %v322_v17 = vadd.f32 %v321_v13, %v320_v9  ;;  %v329_v18 = vadd.f32 %v328_v14, %v327_v10 }
  0xca   : > { %v333_v19 = vrot.slane %v332_v15, 2  ;;  %v340_v20 = vrot.slane %v339_v16, 2 }
  0xcb   : > { %v349_v21 = vsel %vm348_vm0, %v329_v18, %v322_v17 }
  0xcc   : > { %v334_v22 = vadd.f32 %v333_v19, %v332_v15  ;;  %v341_v23 = vadd.f32 %v340_v20, %v339_v16 }
  0xce   : > { %v335_v24 = vrot.slane %v334_v22, 1  ;;  %v342_v25 = vrot.slane %v341_v23, 1 }
  0xd0   : > { %v336_v26 = vadd.f32 %v335_v24, %v334_v22  ;;  %v343_v27 = vadd.f32 %v342_v25, %v341_v23 }
  0xd2   : > { %v351_v28 = vsel %vm350_vm1, %v336_v26, %v349_v21 }
  0xd3   : > { %v353_v29 = vsel %vm352_vm2, %v343_v27, %v351_v28 }
  0xd4   : > { %355 = vst [vmem:[%s171_s16] sm:$0xf] %v353_v29 }
  0xd5   : > { %574 = shalt.err (!%p571_p5)
}
  0xd6   : > { %492 = dma.vmem_to_hbm [thread:$0]  (%p682_p4), %s371_s18, 64, %s373_s20, %s357_s12  }
  0xd7 PF: > { %p498_p6 = scmp.ge.s32.totalorder %s625_s14, 2  ;;  %s384_s30 = sand.u32 1, %s605_s9  }
  0xd8   : > { %s385_s3 = scalar_lea.sflag [#allocation3], %s384_s30 }
  0xd9   : > { %p495_p7 = pnand %p498_p6, %p689_p8 }
  0xdb   : > { %p496_p9 = pneg %p495_p7 }
  0xdd   : > { %600 = dma.done.wait (%p496_p9), %s385_s3, 64  }
  0xde   : > { %602 = vsyncadd (%p496_p9), %s385_s3, 4294967232  ;;  %s15_s14 = sadd.s32 1, %s625_s14   ;;  %s769_s9 = smov %s609_s10 }
  0xdf   : > { %p12_p10 = scmp.ge.s32.totalorder %s15_s14, 4   ;;  %s770_s10 = smov %s613_s11 }
  0xe0   : > { %s771_s11 = smov %s695_s22  ;;  %s772_s12 = smov %s621_s13 }
  0xe1   : > { %s773_s13 = smov %s775_s17  ;;  %14 = sbr.rel (!%p12_p10) target bundleno = 4 (0x4), region = 66 }
  0xe6   :  { %391 = vsyncpa [#allocation3], 1 }
  0xe7   :  { %393 = vsyncpa [#allocation3 + $0x1], 1 }

</bundles_post_ra>
